<compile_context>
chip_gen: v7x
topology: tpu7x:2x2x1
jax: 0.10.0
libtpu: 0.0.40
codegen_flags: <defaults>
</compile_context>

<pallas_src>
import math
import jax
import jax.numpy as jnp
from jax import lax
from jax.experimental import pallas as pl
from jax.experimental.pallas import tpu as pltpu

# lhs [O, I] x rhs [S, I] -> [O, S]  (rhs-transposed "NT" matmul; avoids any
# in-kernel transpose and yields the lane-dense [H, TILE_S] layout directly).
_NT_DIMS = (((1,), (1,)), ((), ()))


def _bahdanau_kernel(ref_ref, qb_ref, wr_ref, br_ref, v_ref,
                     rproj_ref, logits_ref):
    # ref_ref:    [1, TILE_S, H]  raw ref tile (native HBM layout, f32)
    # qb_ref:     [1, H, 1]       hoisted query projection Wq @ q + bq (f32)
    # wr_ref:     [H, H]          W_ref (Conv1d k=1) weight, [out, in]
    # br_ref:     [H, 1]          W_ref bias column (f32)
    # v_ref:      [1, H]          V row (f32)
    # rproj_ref:  [1, H, TILE_S]  out: W_ref(ref^T) + br  (module's returned ref)
    # logits_ref: [1, 1, TILE_S]  out: V . tanh(q_proj + r_proj)
    rt = ref_ref[0]                                   # [TILE_S, H]
    rt = rt.astype(wr_ref.dtype)                      # in-kernel bf16 cast (no extra HBM pass)

    # Conv1d(k=1): r_proj[o, s] = sum_i Wr[o, i] * ref[s, i] + br[o]
    r_proj = lax.dot_general(wr_ref[...], rt, _NT_DIMS,
                             preferred_element_type=jnp.float32)
    r_proj = r_proj + br_ref[...]                     # [H, TILE_S], lane-dense
    rproj_ref[0] = r_proj.astype(rproj_ref.dtype)

    # tanh(expanded_query + r_proj): VPU add + EUP tanh, lane-dense.
    t = jnp.tanh(r_proj + qb_ref[0])

    # logits = V @ tanh(...): lane-dense [1,H] x [H,TILE_S] MXU matvec.
    logits_ref[0] = jnp.dot(v_ref[...], t,
                            preferred_element_type=jnp.float32
                            ).astype(logits_ref.dtype)


def _choose_tiling(S, H, wr_itemsize):
    """VMEM-aware seq-tile pick. Returns (tile_s, padded_S, vmem_limit_bytes)."""
    def vmem_need(ts):
        n = 2 * ts * H * 4            # ref input tile, double-buffered (f32)
        n += 2 * ts * H * 4           # r_proj output tile, double-buffered (f32)
        n += 2 * ts * 4               # logits output tile, double-buffered
        n += 2 * H * H * wr_itemsize  # Wr (pipeline double-buffers it too)
        n += 2 * (2 * H * 4 + H * 4)  # qb, br, V
        return n

    budget = 24 * 1024 * 1024         # safe under v7x physical / raised v5e scoped limit
    cands = [c for c in (2048, 1024, 512, 256, 128) if vmem_need(c) <= budget]
    if not cands:
        cands = [128]
    exact = [c for c in cands if S % c == 0]
    if exact:                         # no padding, no output re-slice pass
        tile_s, s_pad = max(exact), S
    else:                             # pad to a lane-dense multiple (min padding, then larger tile)
        tile_s = min(cands, key=lambda c: (-(-S // c) * c, -c))
        s_pad = -(-S // tile_s) * tile_s
    need = vmem_need(tile_s)
    vmem_limit = int(min(max(need * 3 // 2, 16 * 1024 * 1024), 64 * 1024 * 1024))
    return tile_s, s_pad, vmem_limit


def bahdanau_attention(query, ref, wq, bq, wr, br, V,
                       use_tanh=False, C=10.0, use_bf16=False):
    """Pallas equivalent of Attention.forward (name='Bahdanau').

    query: [B, H] f32, ref: [B, S, H] f32.
    Returns (ref_proj [B, H, S], logits [B, S]) like the PyTorch module,
    where ref_proj = W_ref(ref.permute(0, 2, 1))  (the *projected* ref).
    """
    B, S, H = ref.shape
    f32 = jnp.float32

    # Hoisted query projection: one [B,H]x[H,H] GEMM instead of a degenerate
    # N=1 MXU matvec every grid step; also removes Wq/bq from kernel VMEM.
    qb = query.astype(f32) @ wq.astype(f32).T + bq.astype(f32)     # [B, H]
    qb_col = qb[:, :, None]                                        # [B, H, 1]

    br_col = br.reshape(H, 1).astype(f32)
    v_row = V.reshape(1, H).astype(f32)
    # bf16 MXU operands help on every generation (incl. v5e) once the Wr
    # matmul dominates; ref stays f32 in HBM and is cast inside the kernel.
    wr_in = wr.astype(jnp.bfloat16 if use_bf16 else f32)

    tile_s, s_pad, vmem_limit = _choose_tiling(S, H, wr_in.dtype.itemsize)
    ref_in = ref.astype(f32)
    if s_pad != S:
        ref_in = jnp.pad(ref_in, ((0, 0), (0, s_pad - S), (0, 0)))

    n_tiles = s_pad // tile_s
    # Seq-tile axis first: the (usually) larger axis gets split across the two
    # v7x TensorCores even when B is tiny.  No-op on v5e/v6e.
    grid = (n_tiles, B)
    # Note: for very short sequences, several batches could additionally be
    # packed along the lane axis per step to amortize per-step overhead.

    cost = pl.CostEstimate(
        flops=2 * B * s_pad * H * H + 2 * B * s_pad * H + 3 * B * s_pad * H,
        transcendentals=B * s_pad * H,
        bytes_accessed=(4 * B * s_pad * H            # read ref
                        + 4 * B * s_pad * H          # write projected ref
                        + 4 * B * s_pad              # write logits
                        + wr_in.dtype.itemsize * H * H
                        + 4 * (B * H + 2 * H)),
    )

    rproj_p, logits_p = pl.pallas_call(
        _bahdanau_kernel,
        out_shape=(jax.ShapeDtypeStruct((B, H, s_pad), f32),
                   jax.ShapeDtypeStruct((B, 1, s_pad), f32)),
        grid_spec=pltpu.PrefetchScalarGridSpec(
            num_scalar_prefetch=0,
            grid=grid,
            in_specs=[
                pl.BlockSpec((1, tile_s, H), lambda j, b: (b, j, 0)),  # ref tile
                pl.BlockSpec((1, H, 1), lambda j, b: (b, 0, 0)),       # Wq@q+bq
                pl.BlockSpec((H, H), lambda j, b: (0, 0)),             # Wr
                pl.BlockSpec((H, 1), lambda j, b: (0, 0)),             # br
                pl.BlockSpec((1, H), lambda j, b: (0, 0)),             # V
            ],
            out_specs=[
                pl.BlockSpec((1, H, tile_s), lambda j, b: (b, 0, j)),  # proj ref
                pl.BlockSpec((1, 1, tile_s), lambda j, b: (b, 0, j)),  # logits
            ],
        ),
        compiler_params=pltpu.CompilerParams(
            dimension_semantics=("parallel", "parallel"),
            vmem_limit_bytes=vmem_limit),
        cost_estimate=cost,
    )(ref_in, qb_col, wr_in, br_col, v_row)

    if s_pad != S:
        ref_proj = rproj_p[:, :, :S]
        logits = logits_p[:, 0, :S]
    else:
        ref_proj = rproj_p
        logits = logits_p[:, 0, :]
    if use_tanh:
        logits = C * jnp.tanh(logits)
    return ref_proj, logits


def _reference(query, ref, wq, bq, wr, br, V, use_tanh=False, C=10.0):
    # Pure-JAX mirror of the PyTorch forward (name='Bahdanau').
    ref_t = jnp.transpose(ref, (0, 2, 1))                          # [B, H, S]
    q_proj = query @ wq.T + bq                                     # [B, H]
    r_proj = jnp.einsum('oi,bis->bos', wr, ref_t) + br[None, :, None]
    t = jnp.tanh(q_proj[:, :, None] + r_proj)
    logits = jnp.einsum('h,bhs->bs', V, t)
    if use_tanh:
        logits = C * jnp.tanh(logits)
    return r_proj, logits                                          # projected ref is returned


if __name__ == "__main__":
    B, S, H = 2, 8, 32
    key = jax.random.PRNGKey(0)
    k_q, k_r, k_wq, k_bq, k_wr, k_br, k_v = jax.random.split(key, 7)

    bound = 1.0 / math.sqrt(H)
    query = jax.random.normal(k_q, (B, H), jnp.float32)
    ref = jax.random.normal(k_r, (B, S, H), jnp.float32)
    wq = jax.random.uniform(k_wq, (H, H), jnp.float32, -bound, bound)
    bq = jax.random.uniform(k_bq, (H,), jnp.float32, -bound, bound)
    wr = jax.random.uniform(k_wr, (H, H), jnp.float32, -bound, bound)
    br = jax.random.uniform(k_br, (H,), jnp.float32, -bound, bound)
    V = jax.random.uniform(k_v, (H,), jnp.float32, -bound, bound)

    ref_out, logits = bahdanau_attention(query, ref, wq, bq, wr, br, V)
    jax.block_until_ready((ref_out, logits))

    ref_exp, logits_exp = _reference(query, ref, wq, bq, wr, br, V)
    assert ref_out.shape == (B, H, S)
    assert logits.shape == (B, S)
    assert jnp.allclose(ref_out, ref_exp, atol=1e-5, rtol=1e-5), \
        float(jnp.max(jnp.abs(ref_out - ref_exp)))
    assert jnp.allclose(logits, logits_exp, atol=1e-5, rtol=1e-5), \
        float(jnp.max(jnp.abs(logits - logits_exp)))

    # bf16 MXU path (W_ref bf16 in wrapper, ref cast in-kernel): loose tol.
    ref_bf, logits_bf = bahdanau_attention(query, ref, wq, bq, wr, br, V,
                                           use_bf16=True)
    jax.block_until_ready((ref_bf, logits_bf))
    assert jnp.allclose(ref_bf, ref_exp, atol=5e-2, rtol=5e-2)
    assert jnp.allclose(logits_bf, logits_exp, atol=5e-2, rtol=5e-2)

    print("KERNEL_OK")
</pallas_src>

<mosaic_0001>
module attributes {stable_mosaic.version = 11 : i64} {
  func.func @_bahdanau_kernel(%arg0: i32, %arg1: i32, %arg2: memref<1x128x32xf32, #tpu.memory_space<vmem>>, %arg3: memref<1x32x1xf32, #tpu.memory_space<vmem>>, %arg4: memref<32x32xf32, #tpu.memory_space<vmem>>, %arg5: memref<32x1xf32, #tpu.memory_space<vmem>>, %arg6: memref<1x32xf32, #tpu.memory_space<vmem>>, %arg7: memref<1x32x128xf32, #tpu.memory_space<vmem>>, %arg8: memref<1x1x128xf32, #tpu.memory_space<vmem>>) attributes {dimension_semantics = [#tpu.dimension_semantics<parallel>, #tpu.dimension_semantics<parallel>], iteration_bounds = array<i64: 1, 2>, scalar_prefetch = 0 : i64, scratch_operands = 0 : i64, tpu.core_type = #tpu.core_type<tc>, window_params = [{transform_indices = @transform_0, window_bounds = array<i64: 1, 128, 32>}, {transform_indices = @transform_1, window_bounds = array<i64: 1, 32, 1>}, {pipeline_mode = #tpu.pipeline_mode<synchronous>, transform_indices = @transform_2, window_bounds = array<i64: 32, 32>}, {pipeline_mode = #tpu.pipeline_mode<synchronous>, transform_indices = @transform_3, window_bounds = array<i64: 32, 1>}, {pipeline_mode = #tpu.pipeline_mode<synchronous>, transform_indices = @transform_4, window_bounds = array<i64: 1, 32>}, {transform_indices = @transform_5, window_bounds = array<i64: 1, 32, 128>}, {transform_indices = @transform_6, window_bounds = array<i64: 1, 1, 128>}]} {
    %c0 = arith.constant 0 : index
    %c0_0 = arith.constant 0 : index
    %c0_1 = arith.constant 0 : index
    %0 = vector.load %arg2[%c0, %c0_0, %c0_1] : memref<1x128x32xf32, #tpu.memory_space<vmem>>, vector<1x128x32xf32>
    %1 = vector.shape_cast %0 : vector<1x128x32xf32> to vector<128x32xf32>
    %c0_2 = arith.constant 0 : index
    %c0_3 = arith.constant 0 : index
    %2 = vector.load %arg4[%c0_2, %c0_3] : memref<32x32xf32, #tpu.memory_space<vmem>>, vector<32x32xf32>
    %cst = arith.constant dense<0.000000e+00> : vector<32x128xf32>
    %3 = tpu.matmul %2, %1, %cst {dimension_numbers = #tpu.dot_dimension_numbers<[1], [1], [0], [0], [0, 0, 1, 0], [], []>} : vector<32x32xf32>, vector<128x32xf32>, vector<32x128xf32> -> vector<32x128xf32>
    %c0_4 = arith.constant 0 : index
    %c0_5 = arith.constant 0 : index
    %4 = vector.load %arg5[%c0_4, %c0_5] : memref<32x1xf32, #tpu.memory_space<vmem>>, vector<32x1xf32>
    %5 = vector.broadcast %4 : vector<32x1xf32> to vector<32x128xf32>
    %6 = arith.addf %3, %5 : vector<32x128xf32>
    %c0_6 = arith.constant 0 : index
    %c0_7 = arith.constant 0 : index
    %c0_8 = arith.constant 0 : index
    %7 = vector.load %arg7[%c0_6, %c0_7, %c0_8] : memref<1x32x128xf32, #tpu.memory_space<vmem>>, vector<1x32x128xf32>
    %8 = vector.shape_cast %7 : vector<1x32x128xf32> to vector<32x128xf32>
    %9 = vector.shape_cast %6 : vector<32x128xf32> to vector<1x32x128xf32>
    tpu.vector_store %arg7[%c0_6, %c0_7, %c0_8], %9 {strides = array<i32>} : memref<1x32x128xf32, #tpu.memory_space<vmem>>, vector<1x32x128xf32>,
    %c0_9 = arith.constant 0 : index
    %c0_10 = arith.constant 0 : index
    %c0_11 = arith.constant 0 : index
    %10 = vector.load %arg3[%c0_9, %c0_10, %c0_11] : memref<1x32x1xf32, #tpu.memory_space<vmem>>, vector<1x32x1xf32>
    %11 = vector.shape_cast %10 : vector<1x32x1xf32> to vector<32x1xf32>
    %12 = vector.broadcast %11 : vector<32x1xf32> to vector<32x128xf32>
    %13 = arith.addf %6, %12 : vector<32x128xf32>
    %14 = math.tanh %13 : vector<32x128xf32>
    %c0_12 = arith.constant 0 : index
    %c0_13 = arith.constant 0 : index
    %15 = vector.load %arg6[%c0_12, %c0_13] : memref<1x32xf32, #tpu.memory_space<vmem>>, vector<1x32xf32>
    %cst_14 = arith.constant dense<0.000000e+00> : vector<1x128xf32>
    %16 = tpu.matmul %15, %14, %cst_14 {dimension_numbers = #tpu.dot_dimension_numbers<[1], [0], [0], [1], [0, 0, 1, 1], [], []>} : vector<1x32xf32>, vector<32x128xf32>, vector<1x128xf32> -> vector<1x128xf32>
    %c0_15 = arith.constant 0 : index
    %c0_16 = arith.constant 0 : index
    %c0_17 = arith.constant 0 : index
    %17 = vector.load %arg8[%c0_15, %c0_16, %c0_17] : memref<1x1x128xf32, #tpu.memory_space<vmem>>, vector<1x1x128xf32>
    %18 = vector.shape_cast %17 : vector<1x1x128xf32> to vector<1x128xf32>
    %19 = vector.shape_cast %16 : vector<1x128xf32> to vector<1x1x128xf32>
    tpu.vector_store %arg8[%c0_15, %c0_16, %c0_17], %19 {strides = array<i32>} : memref<1x1x128xf32, #tpu.memory_space<vmem>>, vector<1x1x128xf32>,
    return
  }
  func.func @transform_0(%arg0: i32, %arg1: i32) -> (i32, i32, i32) {
    %c0_i32 = arith.constant 0 : i32
    %c0_i32_0 = arith.constant 0 : i32
    return %arg1, %arg0, %c0_i32 : i32, i32, i32
  }
  func.func @transform_1(%arg0: i32, %arg1: i32) -> (i32, i32, i32) {
    %c0_i32 = arith.constant 0 : i32
    %c0_i32_0 = arith.constant 0 : i32
    %c0_i32_1 = arith.constant 0 : i32
    return %arg1, %c0_i32, %c0_i32_0 : i32, i32, i32
  }
  func.func @transform_2(%arg0: i32, %arg1: i32) -> (i32, i32) {
    %c0_i32 = arith.constant 0 : i32
    %c0_i32_0 = arith.constant 0 : i32
    %c0_i32_1 = arith.constant 0 : i32
    return %c0_i32, %c0_i32_0 : i32, i32
  }
  func.func @transform_3(%arg0: i32, %arg1: i32) -> (i32, i32) {
    %c0_i32 = arith.constant 0 : i32
    %c0_i32_0 = arith.constant 0 : i32
    %c0_i32_1 = arith.constant 0 : i32
    return %c0_i32, %c0_i32_0 : i32, i32
  }
  func.func @transform_4(%arg0: i32, %arg1: i32) -> (i32, i32) {
    %c0_i32 = arith.constant 0 : i32
    %c0_i32_0 = arith.constant 0 : i32
    %c0_i32_1 = arith.constant 0 : i32
    return %c0_i32, %c0_i32_0 : i32, i32
  }
  func.func @transform_5(%arg0: i32, %arg1: i32) -> (i32, i32, i32) {
    %c0_i32 = arith.constant 0 : i32
    %c0_i32_0 = arith.constant 0 : i32
    return %arg1, %c0_i32, %arg0 : i32, i32, i32
  }
  func.func @transform_6(%arg0: i32, %arg1: i32) -> (i32, i32, i32) {
    %c0_i32 = arith.constant 0 : i32
    %c0_i32_0 = arith.constant 0 : i32
    return %arg1, %c0_i32, %arg0 : i32, i32, i32
  }
}

</mosaic_0001>

<bundles_post_ra>
// kernel: tpu_custom_call.1
= control target key start
LH: loop header
LB: loop body
LE: loop exit
PB: predicated region body
PF: predicated region fallthrough
CT: control target
= control target key end

     0   :  { %12 = vsyncpa [#allocation3], 0  ;;  %s1411_s0 = inlined_call_operand.vmem [shape: f32[2,128,32], index: 0, kind: input, shape index: {}]   ;;  %s1412_s1 = inlined_call_operand.vmem [shape: f32[2,32,1], index: 1, kind: input, shape index: {}]   ;;  %s1413_s2 = inlined_call_operand.vmem [shape: f32[32,32], index: 2, kind: input, shape index: {}]   ;;  %s1414_s3 = inlined_call_operand.vmem [shape: f32[32,1], index: 3, kind: input, shape index: {}]   ;;  %s1415_s4 = inlined_call_operand.vmem [shape: f32[1,32], index: 4, kind: input, shape index: {}]   ;;  %s1416_s5 = inlined_call_operand.hbm [shape: f32[2,32,128], index: 5, kind: output, shape index: {0}]   ;;  %s1417_s6 = inlined_call_operand.hbm [shape: f32[2,1,128], index: 6, kind: output, shape index: {1}]  }
   0x1   :  { %14 = vsyncpa [#allocation3 + $0x1], 0 }
   0x2   :  { %15 = vsyncpa [#allocation5], 0 }
   0x3   :  { %17 = vsyncpa [#allocation5 + $0x1], 0  ;;  %s1164_s21 = smov 0   ;;  %s1166_s22 = smov 0  }
   0x4   :  { %s1168_s23 = smov 0   ;;  %s1170_s24 = smov 0  }
   0x5   :  { %s1172_s25 = smov 0   ;;  %s1174_s26 = smov 0  }
   0x6 LB: > { %s765_s27 = sadd.s32 4294967295, %s1119_s26   ;;  %s766_s28 = sadd.s32 4294967294, %s1119_s26   ;;  %s1119_s26 = sphi %s1174_s26, %s23_s26   ;;  %s1115_s25 = sphi %s1172_s25, %s1426_s25   ;;  %s1111_s24 = sphi %s1170_s24, %s1425_s24   ;;  %s1107_s23 = sphi %s1168_s23, %s1424_s23   ;;  %s1103_s22 = sphi %s1166_s22, %s1423_s22   ;;  %s1099_s21 = sphi %s1164_s21, %s1422_s21  }
   0x7   : > { %s32_s29 = sadd.s32 1, %s1115_s25  ;;  %s161_s30 = sadd.s32 1, %s1107_s23 }
   0x8   : > { %p33_p0 = scmp.ge.s32.totalorder %s32_s29, 2  ;;  %p171_p1 = scmp.ne.s32.totalorder %s1107_s23, %s1103_s22 }
   0x9   : > { %p172_p2 = scmp.eq.s32.totalorder %s765_s27, 1  ;;  %p177_p3 = scmp.ne.s32.totalorder %s1103_s22, %s1099_s21 }
   0xa   : > { %s1428_s29 = smov (%p33_p0, %s32_s29), 0  ;;  %p178_p5 = scmp.eq.s32.totalorder %s766_s28, 1 }
   0xb   : > { %p1204_p4 = por %p172_p2, %p171_p1  ;;  %s156_s8 = ssub.s32 %s1115_s25, %s1428_s29 }
   0xc   : > { %p769_p6 = scmp.ge.s32.totalorder %s1119_s26, 1  ;;  %p159_p7 = scmp.eq.s32.totalorder %s156_s8, 0 }
   0xd   : > { %p1211_p8 = por %p178_p5, %p177_p3  ;;  %p254_p9 = scmp.lt.s32.totalorder %s1119_s26, 3 }
   0xe   : > { %s1217_s10 = scalar_select %p159_p7, %s1107_s23, %s161_s30  }
   0xf   : > { %p255_p10 = pnand %p769_p6, %p254_p9 }
  0x10   : > { %p298_p11 = scmp.lt.s32.totalorder (!%p255_p10), %s1111_s24, 1  ;;  %vm356_vm0 = vcmask (!%p255_p10), 261120   ;;  %v328_v0 = vld [vmem:[%s1413_s2] sm:$0xff] (!%p255_p10)  ;;  %v1121_v1 = vmov (!%p255_p10), 0   ;;  %v333_v3 = vld [vmem:[%s1414_s3 + $0x8] sm:$0xff] (!%p255_p10)  ;;  %v334_v11 = vld [vmem:[%s1414_s3 + $0x10] sm:$0xff] (!%p255_p10) }
  0x11   : > { %258 = sbr.rel (%p255_p10) target bundleno = 558 (0x22e), region = 40  ;;  %862 = vmatprep.mubr.msk.f32.mxu0 (!%p255_p10), %vm356_vm0, %v328_v0  ;;  %1000 = vset.pattern.permute.xlu1 (!%p255_p10), %v1121_v1  ;;  %v332_v2 = vld [vmem:[%s1414_s3] sm:$0xff] (!%p255_p10)  ;;  %vm1238_vm1 = vmpackc.low (!%p255_p10), %vm356_vm0, %vm356_vm0  ;;  %v335_v18 = vld [vmem:[%s1414_s3 + $0x18] sm:$0xff] (!%p255_p10)  ;;  %v1122_v38 = vmov (!%p255_p10), 0.0|0.0   ;;  %vm1123_vm2 = vmmov (!%p255_p10), 0   ;;  %v1124_v39 = vmov (!%p255_p10), 0.0  }
  0x12   : > { %999 = vset.pattern.permute.xlu0 (!%p255_p10), %v1121_v1  ;;  %v329_v35 = vld [vmem:[%s1413_s2 + $0x8] sm:$0xff] (!%p255_p10)  ;;  %v330_v36 = vld [vmem:[%s1413_s2 + $0x10] sm:$0xff] (!%p255_p10)  ;;  %v331_v37 = vld [vmem:[%s1413_s2 + $0x18] sm:$0xff] (!%p255_p10)  ;;  %927 = vmatprep.subr.bf16.mxu1 (!%p255_p10), %v1122_v38  ;;  %s804_s14 = sshll.u32 (!%p255_p10), %s1111_s24, 9  ;;  %s1125_s20 = smov (!%p255_p10), [#allocation2]  }
  0x13   : > { %338 = vperm.xlu0 (!%p255_p10), %999, %v332_v2   ;;  %876 = vmatprep.mubr.msk.f32.mxu1 (!%p255_p10), %vm1123_vm2, %v1124_v39  ;;  %v538_v2 = vld [vmem:[%s1415_s4] sm:$0x1] (!%p255_p10)  ;;  %s1332_s17 = scalar_lea.hbm (!%p255_p10), %s1416_s5, %s804_s14 }
  0x17   : > { %343 = vperm.xlu0 (!%p255_p10), %999, %v333_v3  }
  0x18   : > { %s299_s15 = scalar_select %p298_p11, %s1111_s24, 1 }
  0x1a   : > { %s802_s16 = sshll.u32 %s299_s15, 7  ;;  %s803_s28 = sshll.u32 %s299_s15, 5 }
  0x1b   : > { %s1234_s27 = scalar_lea.vmem %s1411_s0, %s802_s16  ;;  %s311_s11 = scalar_lea.vmem %s1412_s1, %s803_s28  ;;  %348 = vperm.xlu0 %999, %v334_v11  }
  0x1c   : > { %v312_v5 = vld [vmem:[%s1234_s27] sm:$0xff]  ;;  %v313_v6 = vld [vmem:[%s1234_s27 + $0x8] sm:$0xff]  ;;  %v314_v7 = vld [vmem:[%s1234_s27 + $0x10] sm:$0xff]  ;;  %s1312_s28 = sand.u32 1, %s1103_s22  }
  0x1d   : > { %v879_v8 = vpack.c.bf16 %v313_v6, %v312_v5  ;;  %v315_v9 = vld [vmem:[%s1234_s27 + $0x18] sm:$0xff]  ;;  %v506_v12 = vld [vmem:[%s311_s11] sm:$0xff]  ;;  %v317_v14 = vld [vmem:[%s1234_s27 + $0x28] sm:$0xff]  ;;  %s770_s30 = sshll.u32 %s1312_s28, 5  ;;  %s614_s18 = scalar_lea.sflag [#allocation3], %s1312_s28 }
  0x1e   : > { %v885_v10 = vpack.c.bf16 %v315_v9, %v314_v7  ;;  %v316_v13 = vld [vmem:[%s1234_s27 + $0x20] sm:$0xff]  ;;  %512 = vperm.xlu1 %1000, %v506_v12   ;;  %v508_v15 = vld [vmem:[%s311_s11 + $0x10] sm:$0xff]  ;;  %v507_v16 = vld [vmem:[%s311_s11 + $0x8] sm:$0xff]  ;;  %s1315_s8 = scalar_lea.vmem [#allocation2], %s770_s30 }
  0x1f   : > { %881 = vmatprep.subr.msk.bf16.mxu0 %vm1238_vm1, %v879_v8  ;;  %v891_v17 = vpack.c.bf16 %v317_v14, %v316_v13  ;;  %522 = vperm.xlu0 %999, %v508_v15   ;;  %v318_v19 = vld [vmem:[%s1234_s27 + $0x30] sm:$0xff]  ;;  %v319_v20 = vld [vmem:[%s1234_s27 + $0x38] sm:$0xff]  ;;  %v320_v23 = vld [vmem:[%s1234_s27 + $0x40] sm:$0xff]  ;;  %s632_s13 = sshll.u32 %s1315_s8, 4  ;;  %s1326_s13 = int_to_ptr.vmem [resolvable:$true] %s632_s13 }
  0x20   : > { %884 = vmatpush3.bf16.xpose.msk.msra.mxu0 %vm1238_vm1, %v879_v8  ;;  %v509_v21 = vld [vmem:[%s311_s11 + $0x18] sm:$0xff]  ;;  %v897_v22 = vpack.c.bf16 %v319_v20, %v318_v19  ;;  %v321_v24 = vld [vmem:[%s1234_s27 + $0x48] sm:$0xff]  ;;  %v322_v26 = vld [vmem:[%s1234_s27 + $0x50] sm:$0xff]  ;;  %s1009_s19 = scalar_lea.vmem %s1326_s13, 512 }
  0x21   : > { %887 = vmatprep.subr.msk.bf16.mxu0 %vm1238_vm1, %v885_v10  ;;  %v903_v25 = vpack.c.bf16 %v321_v24, %v320_v23  ;;  %v323_v27 = vld [vmem:[%s1234_s27 + $0x58] sm:$0xff]  ;;  %v324_v29 = vld [vmem:[%s1234_s27 + $0x60] sm:$0xff]  ;;  %v325_v30 = vld [vmem:[%s1234_s27 + $0x68] sm:$0xff]  ;;  %p1010_p12 = scmp.ne.s32.totalorder %s1326_s13, %s1009_s19 }
  0x22   : > { %517 = vperm.xlu1 %1000, %v507_v16   ;;  %v909_v28 = vpack.c.bf16 %v323_v27, %v322_v26  ;;  %v915_v31 = vpack.c.bf16 %v325_v30, %v324_v29  ;;  %v326_v32 = vld [vmem:[%s1234_s27 + $0x70] sm:$0xff]  ;;  %v327_v33 = vld [vmem:[%s1234_s27 + $0x78] sm:$0xff]  ;;  %s1013_s27 = sshll.u32 %s1125_s20, 4  ;;  %s1014_s27 = int_to_ptr.vmem [resolvable:$false] %s1013_s27 }
  0x23   : > { %v921_v34 = vpack.c.bf16 %v327_v33, %v326_v32  ;;  %p1011_p13 = pnand %p1010_p12, %p1204_p4  ;;  %s1015_s30 = scalar_lea.vmem %s1014_s27, 1024 }
  0x24   : > { %p1016_p1 = scmp.lt.s32.totalorder %s1326_s13, %s1014_s27  ;;  %p1017_p2 = scmp.lt.s32.totalorder %s1015_s30, %s1009_s19 }
  0x25   : > { %p1012_p0 = pneg %p1011_p13 }
  0x26   : > { %353 = vperm.xlu1 %1000, %v335_v18   ;;  %p1018_p3 = por %p1017_p2, %p1016_p1 }
  0x28   : > { %890 = vmatpush3.bf16.xpose.msk.msra.mxu0 %vm1238_vm1, %v885_v10  ;;  %p1019_p5 = pnand %p1018_p3, %p1012_p0 }
  0x29   : > { %893 = vmatprep.subr.msk.bf16.mxu0 %vm1238_vm1, %v891_v17 }
  0x2a   : > { %527 = vperm.xlu1 %1000, %v509_v21  }
  0x30   : > { %896 = vmatpush3.bf16.xpose.msk.msra.mxu0 %vm1238_vm1, %v891_v17 }
  0x31   : > { %899 = vmatprep.subr.msk.bf16.mxu0 %vm1238_vm1, %v897_v22 }
  0x38   : > { %902 = vmatpush3.bf16.xpose.msk.msra.mxu0 %vm1238_vm1, %v897_v22 }
  0x39   : > { %905 = vmatprep.subr.msk.bf16.mxu0 %vm1238_vm1, %v903_v25 }
  0x40   : > { %908 = vmatpush3.bf16.xpose.msk.msra.mxu0 %vm1238_vm1, %v903_v25 }
  0x41   : > { %911 = vmatprep.subr.msk.bf16.mxu0 %vm1238_vm1, %v909_v28 }
  0x48   : > { %914 = vmatpush3.bf16.xpose.msk.msra.mxu0 %vm1238_vm1, %v909_v28 }
  0x49   : > { %917 = vmatprep.subr.msk.bf16.mxu0 %vm1238_vm1, %v915_v31 }
  0x50   : > { %920 = vmatpush3.bf16.xpose.msk.msra.mxu0 %vm1238_vm1, %v915_v31 }
  0x51   : > { %923 = vmatprep.subr.msk.bf16.mxu0 %vm1238_vm1, %v921_v34 }
  0x58   : > { %926 = vmatpush3.bf16.xpose.msk.msra.mxu0 %vm1238_vm1, %v921_v34 }
  0x5f   : > { %863 = vmatmul.mubr.msk.f32.vlgmr.msra.gmra.mrb[0].mxu0 %vm356_vm0, %v329_v35 }
  0x60   : > { %865 = vmatprep.mubr.msk.f32.mxu0 %vm356_vm0, %v330_v36 }
  0x63   : > { %866 = vmatmul.mubr.msk.f32.gmra.mrb[2].mxu0 %vm356_vm0, %v331_v37 }
  0x92   : > { %v339_v41 = vpop.permute.xlu0 %338 }
  0x96   : > { %v344_v43 = vpop.permute.xlu0 %343 }
  0x9a   : > { %v349_v46 = vpop.permute.xlu0 %348 }
  0x9d   : > { %v513_v40 = vpop.permute.xlu1 %512 }
  0x9e   : > { %v523_v57 = vpop.permute.xlu0 %522 }
  0xa1   : > { %v518_v42 = vpop.permute.xlu1 %517 }
  0xa5   : > { %v354_v44 = vpop.permute.xlu1 %353 }
  0xa9   : > { %v528_v55 = vpop.permute.xlu1 %527 }
 0x132   : > { %v864_v45 = vpop.f32.mrb[0].mxu0 }
 0x133   : > { %v489_v47 = vadd.f32 %v864_v45, %v344_v43  ;;  %v483_v48 = vpop.f32.mrb[1].mxu0 }
 0x134   : > { %v484_v49 = vadd.f32 %v483_v48, %v339_v41 }
 0x135   : > { %503 = vst [vmem:[%s1315_s8 + $0x8] sm:$0xff] %v489_v47  ;;  %v531_v50 = vadd.f32 %v518_v42, %v489_v47 }
 0x136   : > { %502 = vst [vmem:[%s1315_s8] sm:$0xff] %v484_v49  ;;  %v530_v51 = vadd.f32 %v513_v40, %v484_v49  ;;  %v867_v52 = vpop.f32.mrb[2].mxu0 }
 0x137   : > { %1001 = vtanh.f32 %v531_v50  ;;  %v499_v53 = vadd.f32 %v867_v52, %v354_v44  ;;  %v493_v54 = vpop.f32.mrb[3].mxu0 }
 0x138   : > { %1003 = vtanh.f32 %v530_v51  ;;  %v494_v56 = vadd.f32 %v493_v54, %v349_v46 }
 0x139   : > { %505 = vst [vmem:[%s1315_s8 + $0x18] sm:$0xff] %v499_v53  ;;  %v533_v58 = vadd.f32 %v528_v55, %v499_v53 }
 0x13a   : > { %504 = vst [vmem:[%s1315_s8 + $0x10] sm:$0xff] %v494_v56  ;;  %v532_v59 = vadd.f32 %v523_v57, %v494_v56 }
 0x13b   : > { %1005 = vtanh.f32 %v533_v58 }
 0x13c   : > { %1007 = vtanh.f32 %v532_v59 }
 0x141   : > { %v1002_v60 = vpop.eup %1001 }
 0x142   : > { %v1004_v61 = vpop.eup %1003 }
 0x143   : > { %v928_v62 = vpack.c.bf16 %v1002_v60, %v1004_v61 }
 0x145   : > { %v1006_v63 = vpop.eup %1005  ;;  %929 = vmatpush3.bf16.msra.mxu1 %v928_v62 }
 0x146   : > { %v1008_v0 = vpop.eup %1007  ;;  %930 = vmatprep.subr.bf16.mxu1 %v1122_v38 }
 0x147   : > { %v931_v1 = vpack.c.bf16 %v1006_v63, %v1008_v0 }
 0x149   : > { %932 = vmatpush3.bf16.msra.mxu1 %v931_v1 }
 0x14c   : > { %877 = vmatmul.mubr.msk.f32.vlgmr.msra.gmra.mrb[0].mxu1 %vm356_vm0, %v538_v2 }
 0x14d   : > { %1022 = shalt.err (!%p1019_p5)
}
 0x14e   : > { %s1023_s8 = scalar_lea.hbm %s1332_s17, 512  ;;  %s1027_s14 = scalar_lea.hbm %s1416_s5, 1024 }
 0x14f   : > { %p1024_p6 = scmp.ne.s32.totalorder %s1332_s17, %s1023_s8  ;;  %p1028_p10 = scmp.lt.u32.totalorder %s1332_s17, %s1416_s5 }
 0x150   : > { %p1029_p11 = scmp.lt.u32.totalorder %s1027_s14, %s1023_s8  ;;  %p1031_p13 = scmp.lt.u32.totalorder %s1023_s8, %s1332_s17 }
 0x151   : > { %p1025_p7 = pnand %p1024_p6, %p1204_p4 }
 0x152   : > { %p1030_p12 = por %p1029_p11, %p1028_p10 }
 0x153   : > { %p1026_p9 = pneg %p1025_p7 }
 0x154   : > { %p1032_p0 = por %p1031_p13, %p1030_p12 }
 0x156   : > { %p1033_p1 = pnand %p1032_p0, %p1026_p9 }
 0x158   : > { %1036 = shalt.err (!%p1033_p1)
}
 0x159   : > { %s1126_s19 = smov 128   ;;  %s1127_s20 = smov 8  }
 0x15a   : > { %933 = dma.vmem_to_hbm [thread:$0]  (%p1204_p4), %s1326_s13, 512, %s1332_s17, %s614_s18, %s1126_s19, %s1126_s19, %s1127_s20  }
 0x15b   : > { %s296_s27 = scalar_lea.vmem [#allocation4], %s1312_s28  ;;  %s799_s11 = sshll.u32 %s1111_s24, 4 }
 0x15c   : > { %s649_s30 = sshll.u32 %s296_s27, 4  ;;  %s1365_s14 = scalar_lea.hbm %s1417_s6, %s799_s11  ;;  %s1360_s30 = int_to_ptr.vmem [resolvable:$true] %s649_s30 }
 0x15d   : > { %s619_s15 = scalar_lea.sflag [#allocation5], %s1312_s28  ;;  %s1037_s16 = scalar_lea.vmem %s1360_s30, 16 }
 0x15e   : > { %p1038_p2 = scmp.ne.s32.totalorder %s1360_s30, %s1037_s16  ;;  %s1128_s24 = smov [#allocation4]  }
 0x15f   : > { %s1041_s13 = sshll.u32 %s1128_s24, 4  ;;  %s1042_s13 = int_to_ptr.vmem [resolvable:$false] %s1041_s13 }
 0x160   : > { %p1039_p3 = pnand %p1038_p2, %p1204_p4  ;;  %s1043_s17 = scalar_lea.vmem %s1042_s13, 32 }
 0x161   : > { %p1044_p6 = scmp.lt.s32.totalorder %s1360_s30, %s1042_s13  ;;  %p1045_p7 = scmp.lt.s32.totalorder %s1043_s17, %s1037_s16 }
 0x162   : > { %p1040_p5 = pneg %p1039_p3 }
 0x163   : > { %p1046_p9 = por %p1045_p7, %p1044_p6 }
 0x165   : > { %p1047_p10 = pnand %p1046_p9, %p1040_p5 }
 0x21f   : > { %v608_v3 = vpop.f32.mrb[0].mxu1 }
 0x220   : > { %612 = vst [vmem:[%s296_s27] sm:$0x1] %v608_v3  ;;  %v878_v4 = vpop.f32.mrb[1].mxu1 }
 0x221   : > { %1050 = shalt.err (!%p1047_p10)
}
 0x222   : > { %s1051_s28 = scalar_lea.hbm %s1365_s14, 16  ;;  %s1055_s20 = scalar_lea.hbm %s1417_s6, 32 }
 0x223   : > { %p1052_p11 = scmp.ne.s32.totalorder %s1365_s14, %s1051_s28  ;;  %p1056_p0 = scmp.lt.u32.totalorder %s1365_s14, %s1417_s6 }
 0x224   : > { %p1057_p1 = scmp.lt.u32.totalorder %s1055_s20, %s1051_s28  ;;  %p1059_p3 = scmp.lt.u32.totalorder %s1051_s28, %s1365_s14 }
 0x225   : > { %p1053_p12 = pnand %p1052_p11, %p1204_p4 }
 0x226   : > { %p1058_p2 = por %p1057_p1, %p1056_p0 }
 0x227   : > { %p1054_p13 = pneg %p1053_p12 }
 0x228   : > { %p1060_p5 = por %p1059_p3, %p1058_p2 }
 0x22a   : > { %p1061_p6 = pnand %p1060_p5, %p1054_p13 }
 0x22c   : > { %1064 = shalt.err (!%p1061_p6)
}
 0x22d   : > { %934 = dma.vmem_to_hbm [thread:$0]  (%p1204_p4), %s1360_s30, 16, %s1365_s14, %s619_s15  }
 0x22e PF: > { %p944_p7 = scmp.ge.s32.totalorder %s1119_s26, 2  ;;  %s661_s8 = sand.u32 1, %s1099_s21  }
 0x22f   : > { %s662_s12 = scalar_lea.sflag [#allocation3], %s661_s8 }
 0x230   : > { %p938_p9 = pnand %p944_p7, %p1211_p8 }
 0x232   : > { %1090 = dma.done.wait (!%p938_p9), %s662_s12, 512  }
 0x233   : > { %1092 = vsyncadd (!%p938_p9), %s662_s12, 4294966784  ;;  %s671_s16 = scalar_lea.sflag [#allocation5], %s661_s8 }
 0x234   : > { %1094 = dma.done.wait (!%p938_p9), %s671_s16, 16  }
 0x235   : > { %1096 = vsyncadd (!%p938_p9), %s671_s16, 4294967280  ;;  %s23_s26 = sadd.s32 1, %s1119_s26   ;;  %s1422_s21 = smov %s1103_s22 }
 0x236   : > { %p20_p10 = scmp.ge.s32.totalorder %s23_s26, 4   ;;  %s1423_s22 = smov %s1107_s23 }
 0x237   : > { %s1424_s23 = smov %s1217_s10  ;;  %s1425_s24 = smov %s1115_s25 }
 0x238   : > { %s1426_s25 = smov %s1428_s29  ;;  %22 = sbr.rel (!%p20_p10) target bundleno = 6 (0x6), region = 95 }
 0x23f   :  { %675 = vsyncpa [#allocation3], 1 }
 0x240   :  { %677 = vsyncpa [#allocation3 + $0x1], 1 }
 0x241   :  { %678 = vsyncpa [#allocation5], 1 }
 0x242   :  { %680 = vsyncpa [#allocation5 + $0x1], 1 }

</bundles_post_ra>
